<compile_context>
chip_gen: v6e
topology: v6e:2x2x1
jax: 0.10.0
libtpu: 0.0.40
codegen_flags: <defaults>
</compile_context>

<pallas_src>
import functools

import jax
import jax.numpy as jnp
from jax.experimental import pallas as pl
from jax.experimental.pallas import tpu as pltpu


def _round_up(x, m):
    return (x + m - 1) // m * m


# --------------------------------------------------------------------------- #
# Kernels
# --------------------------------------------------------------------------- #

def gmu_kernel_compact(hidden, x_ref, w_ref, b_ref, out_ref):
    """Compact layout (hidden <= 64): one MXU matmul over 256 packed columns.

    w_ref columns: [0:H]=W1, [64:64+H]=W2 (group 0), [128:128+H]=Wz (group 1).
    x_ref  : [bn, Da+Db]
    w_ref  : [Da+Db, 256]   (f32 or bf16)
    b_ref  : [1, 256]       f32
    out_ref: [bn, hidden]
    """
    w = w_ref[...]
    x = x_ref[...].astype(w.dtype)                  # in-kernel cast (no extra HBM pass)
    acc = jnp.dot(x, w, preferred_element_type=jnp.float32) + b_ref[...]   # [bn, 256]

    t = jnp.tanh(acc[:, :128])                      # h1 in lanes [0:H], h2 in [64:64+H]
    z = jax.nn.sigmoid(acc[:, 128:])                # gate in lanes [0:H]
    # Half-width lane roll (XLU slot): brings h2 from lanes [64:64+H] to [0:H].
    h2 = pltpu.roll(t, shift=64, axis=1)
    fused = h2 + z * (t - h2)                       # == z*h1 + (1-z)*h2 in lanes [0:H]
    out_ref[...] = fused[:, :hidden].astype(out_ref.dtype)


def gmu_kernel_wide(hidden, hp, x_ref, w_ref, b_ref, out_ref):
    """General layout (hidden > 64): three 128-aligned column groups of width Hp.

    w_ref columns: [0:Hp]=W1, [Hp:2Hp]=W2, [2Hp:3Hp]=Wz (each zero-padded to Hp).
    """
    w = w_ref[...]
    x = x_ref[...].astype(w.dtype)
    acc = jnp.dot(x, w, preferred_element_type=jnp.float32) + b_ref[...]   # [bn, 3*Hp]

    t = jnp.tanh(acc[:, :2 * hp])                   # one tanh covers h1 and h2 groups
    z = jax.nn.sigmoid(acc[:, 2 * hp:])
    h1 = t[:, :hp]                                  # 128-aligned slices
    h2 = t[:, hp:]
    fused = h2 + z * (h1 - h2)
    out_ref[...] = fused[:, :hidden].astype(out_ref.dtype)


# --------------------------------------------------------------------------- #
# Parameter packing
# --------------------------------------------------------------------------- #

def pack_gmu_params_compact(params, da, db, hidden):
    """hidden <= 64: pack into [K, 256] / [1, 256]."""
    w1, b1, w2, b2, wz, bz = params
    k = da + db
    gcols = 256
    w_all = jnp.zeros((k, gcols), jnp.float32)
    w_all = w_all.at[:da, 0:hidden].set(w1)
    w_all = w_all.at[da:, 64:64 + hidden].set(w2)
    w_all = w_all.at[:, 128:128 + hidden].set(wz)
    b_all = jnp.zeros((1, gcols), jnp.float32)
    b_all = b_all.at[:, 0:hidden].set(b1.reshape(1, -1))
    b_all = b_all.at[:, 64:64 + hidden].set(b2.reshape(1, -1))
    b_all = b_all.at[:, 128:128 + hidden].set(bz.reshape(1, -1))
    return w_all, b_all


def pack_gmu_params_wide(params, da, db, hidden, hp):
    """hidden > 64: pack into [K, 3*Hp] / [1, 3*Hp] with Hp = round_up(hidden,128)."""
    w1, b1, w2, b2, wz, bz = params
    k = da + db
    gcols = 3 * hp
    w_all = jnp.zeros((k, gcols), jnp.float32)
    w_all = w_all.at[:da, 0:hidden].set(w1)
    w_all = w_all.at[da:, hp:hp + hidden].set(w2)
    w_all = w_all.at[:, 2 * hp:2 * hp + hidden].set(wz)
    b_all = jnp.zeros((1, gcols), jnp.float32)
    b_all = b_all.at[:, 0:hidden].set(b1.reshape(1, -1))
    b_all = b_all.at[:, hp:hp + hidden].set(b2.reshape(1, -1))
    b_all = b_all.at[:, 2 * hp:2 * hp + hidden].set(bz.reshape(1, -1))
    return w_all, b_all


# --------------------------------------------------------------------------- #
# Wrapper
# --------------------------------------------------------------------------- #

def gmu_fusion_forward(data, params, input_dim_a, input_dim_b, *,
                       block_rows=4096, mxu_bf16=False,
                       out_dtype=jnp.float32, vmem_limit_bytes=None):
    """Pallas wrapper. data: [N, Da+Db]. Returns (fused, fused), each [N, hidden]."""
    hidden = params[0].shape[1]
    n, k = data.shape
    assert k == input_dim_a + input_dim_b

    if hidden <= 64:
        w_all, b_all = pack_gmu_params_compact(params, input_dim_a, input_dim_b, hidden)
        kernel = functools.partial(gmu_kernel_compact, hidden)
    else:
        hp = _round_up(hidden, 128)
        w_all, b_all = pack_gmu_params_wide(params, input_dim_a, input_dim_b, hidden, hp)
        kernel = functools.partial(gmu_kernel_wide, hidden, hp)
    gcols = w_all.shape[1]

    if mxu_bf16:
        # Only the tiny resident weights are cast here; the data tile is cast
        # in-kernel (no extra wrapper-side HBM pass).  Accumulation stays f32.
        w_all = w_all.astype(jnp.bfloat16)

    # Row tiling: big blocks to amortize the ~0.35us per-grid-step overhead, but
    # at least 2 grid steps when possible so v7x's two TensorCores both get work.
    # bn=4096 keeps double-buffered blocks well under the 32 MiB scoped-VMEM
    # default on all chips; sweep 2048-8192 (raise vmem_limit_bytes for 8192+).
    if n <= 16:
        bn = n
    else:
        bn = min(block_rows, _round_up(pl.cdiv(n, 2), 8))
    grid = (pl.cdiv(n, bn),)

    out = pl.pallas_call(
        kernel,
        out_shape=jax.ShapeDtypeStruct((n, hidden), out_dtype),
        grid=grid,
        in_specs=[
            pl.BlockSpec((bn, k), lambda i: (i, 0)),        # row-tiled data
            pl.BlockSpec((k, gcols), lambda i: (0, 0)),     # packed weights (resident)
            pl.BlockSpec((1, gcols), lambda i: (0, 0)),     # packed bias (resident)
        ],
        out_specs=pl.BlockSpec((bn, hidden), lambda i: (i, 0)),  # unpadded output
        compiler_params=pltpu.CompilerParams(
            dimension_semantics=("parallel",),              # megacore row sharding
            vmem_limit_bytes=vmem_limit_bytes),
    )(data, w_all, b_all)

    # Fusion_Layer returns (out, out) for the gmu branch.
    return out, out


# --------------------------------------------------------------------------- #
# Init + reference
# --------------------------------------------------------------------------- #

def init_params(key, input_dim_a, input_dim_b, hidden_dim):
    """Init mimicking nn.Linear's U(-1/sqrt(fan_in), 1/sqrt(fan_in)).

    Weights stored as [in_features, hidden] (transposed vs PyTorch); biases [1, hidden].
    """
    ks = jax.random.split(key, 6)

    def linear(kw, kb, fan_in, fan_out):
        bound = 1.0 / jnp.sqrt(float(fan_in))
        w = jax.random.uniform(kw, (fan_in, fan_out), jnp.float32, -bound, bound)
        b = jax.random.uniform(kb, (1, fan_out), jnp.float32, -bound, bound)
        return w, b

    w1, b1 = linear(ks[0], ks[1], input_dim_a, hidden_dim)
    w2, b2 = linear(ks[2], ks[3], input_dim_b, hidden_dim)
    wz, bz = linear(ks[4], ks[5], input_dim_a + input_dim_b, hidden_dim)
    return (w1, b1, w2, b2, wz, bz)


def gmu_fusion_reference(data, params, input_dim_a, input_dim_b):
    """Pure-JAX reference of the PyTorch forward (eval mode)."""
    w1, b1, w2, b2, wz, bz = params
    x_a = data[:, :input_dim_a]
    x_b = data[:, input_dim_a:input_dim_a + input_dim_b]
    h1 = jnp.tanh(x_a @ w1 + b1)
    h2 = jnp.tanh(x_b @ w2 + b2)
    z = jax.nn.sigmoid(data @ wz + bz)
    return z * h1 + (1.0 - z) * h2


if __name__ == "__main__":
    # Small shapes consistent with the module: num_edges=8, Da=Db=20.
    NUM_EDGES = 8
    INPUT_DIM_A = 20
    INPUT_DIM_B = 20

    key = jax.random.PRNGKey(0)
    k_data, k_p32, k_p100 = jax.random.split(key, 3)
    data = jax.random.normal(
        k_data, (NUM_EDGES, INPUT_DIM_A + INPUT_DIM_B), dtype=jnp.float32)

    # --- Compact path (hidden <= 64): hidden = 32, f32 MXU operands ---------
    params32 = init_params(k_p32, INPUT_DIM_A, INPUT_DIM_B, 32)
    ref32 = gmu_fusion_reference(data, params32, INPUT_DIM_A, INPUT_DIM_B)
    out1, out2 = gmu_fusion_forward(data, params32, INPUT_DIM_A, INPUT_DIM_B)
    out1 = jax.block_until_ready(out1)
    out2 = jax.block_until_ready(out2)
    assert out1.shape == (NUM_EDGES, 32)
    assert jnp.allclose(out1, ref32, atol=1e-5, rtol=1e-5), "f32 mismatch vs reference"
    assert jnp.allclose(out1, out2), "gmu branch must return identical pair"

    # --- bf16 MXU-operand path (f32 accumulation/epilogue) ------------------
    out_bf, _ = gmu_fusion_forward(
        data, params32, INPUT_DIM_A, INPUT_DIM_B, mxu_bf16=True)
    out_bf = jax.block_until_ready(out_bf)
    assert jnp.allclose(out_bf, ref32, atol=1e-2, rtol=0), "bf16 mismatch vs reference"

    # --- Wide path (hidden > 64): module default n_hidden = 100 -------------
    params100 = init_params(k_p100, INPUT_DIM_A, INPUT_DIM_B, 100)
    ref100 = gmu_fusion_reference(data, params100, INPUT_DIM_A, INPUT_DIM_B)
    outw, _ = gmu_fusion_forward(data, params100, INPUT_DIM_A, INPUT_DIM_B)
    outw = jax.block_until_ready(outw)
    assert outw.shape == (NUM_EDGES, 100)
    assert jnp.allclose(outw, ref100, atol=1e-5, rtol=1e-5), "wide-path mismatch"

    print("KERNEL_OK")
</pallas_src>

<mosaic_0001>
module attributes {stable_mosaic.version = 11 : i64} {
  func.func @gmu_kernel_compact(%arg0: i32, %arg1: memref<8x40xf32, #tpu.memory_space<vmem>>, %arg2: memref<40x256xf32, #tpu.memory_space<vmem>>, %arg3: memref<1x256xf32, #tpu.memory_space<vmem>>, %arg4: memref<8x32xf32, #tpu.memory_space<vmem>>) attributes {dimension_semantics = [#tpu.dimension_semantics<parallel>], iteration_bounds = array<i64: 1>, scalar_prefetch = 0 : i64, scratch_operands = 0 : i64, tpu.core_type = #tpu.core_type<tc>, window_params = [{transform_indices = @transform_0, window_bounds = array<i64: 8, 40>}, {pipeline_mode = #tpu.pipeline_mode<synchronous>, transform_indices = @transform_1, window_bounds = array<i64: 40, 256>}, {pipeline_mode = #tpu.pipeline_mode<synchronous>, transform_indices = @transform_2, window_bounds = array<i64: 1, 256>}, {transform_indices = @transform_3, window_bounds = array<i64: 8, 32>}]} {
    %c0 = arith.constant 0 : index
    %c0_0 = arith.constant 0 : index
    %0 = vector.load %arg2[%c0, %c0_0] : memref<40x256xf32, #tpu.memory_space<vmem>>, vector<40x256xf32>
    %c0_1 = arith.constant 0 : index
    %c0_2 = arith.constant 0 : index
    %1 = vector.load %arg1[%c0_1, %c0_2] : memref<8x40xf32, #tpu.memory_space<vmem>>, vector<8x40xf32>
    %cst = arith.constant dense<0.000000e+00> : vector<8x256xf32>
    %2 = tpu.matmul %1, %0, %cst {dimension_numbers = #tpu.dot_dimension_numbers<[1], [0], [0], [1], [0, 0, 1, 1], [], []>} : vector<8x40xf32>, vector<40x256xf32>, vector<8x256xf32> -> vector<8x256xf32>
    %c0_3 = arith.constant 0 : index
    %c0_4 = arith.constant 0 : index
    %3 = vector.load %arg3[%c0_3, %c0_4] : memref<1x256xf32, #tpu.memory_space<vmem>>, vector<1x256xf32>
    %4 = vector.broadcast %3 : vector<1x256xf32> to vector<8x256xf32>
    %5 = arith.addf %2, %4 : vector<8x256xf32>
    %6 = vector.extract_strided_slice %5 {offsets = [0, 0], sizes = [8, 128], strides = [1, 1]} : vector<8x256xf32> to vector<8x128xf32>
    %7 = math.tanh %6 : vector<8x128xf32>
    %8 = vector.extract_strided_slice %5 {offsets = [0, 128], sizes = [8, 128], strides = [1, 1]} : vector<8x256xf32> to vector<8x128xf32>
    %9 = arith.negf %8 : vector<8x128xf32>
    %10 = math.exp %9 : vector<8x128xf32>
    %cst_5 = arith.constant 1.000000e+00 : f32
    %11 = vector.broadcast %cst_5 : f32 to vector<8x128xf32>
    %12 = arith.addf %11, %10 : vector<8x128xf32>
    %13 = arith.divf %11, %12 : vector<8x128xf32>
    %c64_i32 = arith.constant 64 : i32
    %14 = tpu.dynamic_rotate %7 by %c64_i32 dim 1 : vector<8x128xf32>, i32 -> vector<8x128xf32>
    %15 = arith.subf %7, %14 : vector<8x128xf32>
    %16 = arith.mulf %13, %15 : vector<8x128xf32>
    %17 = arith.addf %14, %16 : vector<8x128xf32>
    %18 = vector.extract_strided_slice %17 {offsets = [0, 0], sizes = [8, 32], strides = [1, 1]} : vector<8x128xf32> to vector<8x32xf32>
    %c0_6 = arith.constant 0 : index
    %c0_7 = arith.constant 0 : index
    %19 = vector.load %arg4[%c0_6, %c0_7] : memref<8x32xf32, #tpu.memory_space<vmem>>, vector<8x32xf32>
    tpu.vector_store %arg4[%c0_6, %c0_7], %18 {strides = array<i32>} : memref<8x32xf32, #tpu.memory_space<vmem>>, vector<8x32xf32>,
    return
  }
  func.func @transform_0(%arg0: i32) -> (i32, i32) {
    %c0_i32 = arith.constant 0 : i32
    %c0_i32_0 = arith.constant 0 : i32
    return %arg0, %c0_i32 : i32, i32
  }
  func.func @transform_1(%arg0: i32) -> (i32, i32) {
    %c0_i32 = arith.constant 0 : i32
    %c0_i32_0 = arith.constant 0 : i32
    %c0_i32_1 = arith.constant 0 : i32
    return %c0_i32, %c0_i32_0 : i32, i32
  }
  func.func @transform_2(%arg0: i32) -> (i32, i32) {
    %c0_i32 = arith.constant 0 : i32
    %c0_i32_0 = arith.constant 0 : i32
    %c0_i32_1 = arith.constant 0 : i32
    return %c0_i32, %c0_i32_0 : i32, i32
  }
  func.func @transform_3(%arg0: i32) -> (i32, i32) {
    %c0_i32 = arith.constant 0 : i32
    %c0_i32_0 = arith.constant 0 : i32
    return %arg0, %c0_i32 : i32, i32
  }
}

</mosaic_0001>

<bundles_post_ra>
// kernel: tpu_custom_call.1
= control target key start
LH: loop header
LB: loop body
LE: loop exit
PB: predicated region body
PF: predicated region fallthrough
CT: control target
= control target key end

     0   :  { %8 = vsyncpa [#allocation3], 0  ;;  %s289_s0 = inlined_call_operand.hbm [shape: f32[8,40], index: 0, kind: input, shape index: {}]   ;;  %s290_s1 = inlined_call_operand.hbm [shape: f32[40,256], index: 1, kind: input, shape index: {}]   ;;  %s291_s2 = inlined_call_operand.vmem [shape: f32[1,256], index: 2, kind: input, shape index: {}]   ;;  %s292_s3 = inlined_call_operand.hbm [shape: f32[8,32], index: 3, kind: output, shape index: {}]  }
   0x1   :  { %9 = vsyncpa [#allocation6], 0 }
   0x2   :  { %10 = vsyncpa [#allocation4], 0  ;;  %s250_s12 = smov [#allocation2]   ;;  %s251_s14 = smov [#allocation5]  }
   0x3   :  { %s17_s13 = sshll.u32 %s250_s12, 4  ;;  %s26_s15 = sshll.u32 %s251_s14, 4  ;;  %s18_s13 = int_to_ptr.vmem [resolvable:$true] %s17_s13  ;;  %s27_s15 = int_to_ptr.vmem [resolvable:$true] %s26_s15 }
   0x4   :  { %s192_s16 = scalar_lea.vmem %s18_s13, 128  ;;  %p197_p1 = scmp.lt.s32.totalorder %s18_s13, %s18_s13 }
   0x5   :  { %p193_p0 = scmp.ne.s32.totalorder %s18_s13, %s192_s16  ;;  %p198_p2 = scmp.lt.s32.totalorder %s192_s16, %s192_s16 }
   0x7   :  { %p199_p3 = por %p198_p2, %p197_p1 }
   0x9   :  { %p200_p4 = pnand %p199_p3, %p193_p0 }
   0xb   :  { %203 = shalt.err (!%p200_p4)
}
   0xc   :  { %20 = dma.hbm_to_vmem [thread:$0]  %s289_s0, 128, %s18_s13, [#allocation3]  }
   0xd   :  { %s212_s19 = scalar_lea.vmem %s27_s15, 1280  ;;  %p217_p6 = scmp.lt.s32.totalorder %s27_s15, %s27_s15 }
   0xe   :  { %p213_p5 = scmp.ne.s32.totalorder %s27_s15, %s212_s19  ;;  %p218_p7 = scmp.lt.s32.totalorder %s212_s19, %s212_s19 }
  0x10   :  { %p219_p8 = por %p218_p7, %p217_p6 }
  0x12   :  { %p220_p9 = pnand %p219_p8, %p213_p5 }
  0x14   :  { %223 = shalt.err (!%p220_p9)
}
  0x15   :  { %s252_s20 = smov 256   ;;  %s253_s21 = smov 16  }
  0x16   :  { %32 = dma.hbm_to_vmem [thread:$0]  %s290_s1, 1280, %s27_s15, [#allocation6], %s252_s20, %s252_s20, %s253_s21  }
  0x17   :  { %244 = dma.done.wait [#allocation3], 128  }
  0x18   :  { %245 = vsyncadd [#allocation3], 4294967168 }
  0x19   :  { %246 = dma.done.wait [#allocation6], 1280  }
  0x1a   :  { %247 = vsyncadd [#allocation6], 4294966016  ;;  %v254_v0 = vmov 0.0   ;;  %v50_v1 = vld [vmem:[#allocation5 + $0x48] sm:$0xff]  ;;  %v49_v2 = vld [vmem:[#allocation5 + $0x40] sm:$0xff]  ;;  %vm64_vm0 = vcmask 326656   ;;  %v54_v12 = vlaneseq }
  0x1b   :  { %132 = vmatprep.mubr.f32.mxu0 %v254_v0  ;;  %v48_v3 = vld [vmem:[#allocation5 + $0x38] sm:$0xff]  ;;  %90 = vmatprep.subr.mxu0 %v50_v1  ;;  %v47_v4 = vld [vmem:[#allocation5 + $0x30] sm:$0xff]  ;;  %v46_v5 = vld [vmem:[#allocation5 + $0x28] sm:$0xff]  ;;  %s255_s24 = smov 64   ;;  %vm151_vm1 = vcmask 261120  }
  0x1c   :  { %91 = vmatpush1.msra.mxu0 %v49_v2  ;;  %v45_v6 = vld [vmem:[#allocation5 + $0x20] sm:$0xff]  ;;  %v44_v7 = vld [vmem:[#allocation5 + $0x18] sm:$0xff]  ;;  %v43_v8 = vld [vmem:[#allocation5 + $0x10] sm:$0xff]  ;;  %v55_v13 = vshrl.u32 %v54_v12, 7 }
  0x1d   :  { %92 = vmatprep.subr.mxu0 %v48_v3  ;;  %v42_v9 = vld [vmem:[#allocation5 + $0x8] sm:$0xff]  ;;  %v41_v10 = vld [vmem:[#allocation5] sm:$0xff]  ;;  %v51_v11 = vld [vmem:[#allocation2] sm:$0xff] }
  0x1e   :  { %93 = vmatpush1.msra.mxu0 %v47_v4  ;;  %v56_v14 = vsub.s32 0, %v55_v13  ;;  %v52_v15 = vld [vmem:[%s291_s2] sm:$0x3]  ;;  %v60_v20 = vsub.s32 1, %v55_v13  ;;  %s256_s2 = smov [#allocation7]  }
  0x1f   :  { %94 = vmatprep.subr.mxu0 %v46_v5  ;;  %s159_s25 = sshll.u32 %s256_s2, 4  ;;  %s160_s25 = int_to_ptr.vmem [resolvable:$true] %s159_s25 }
  0x20   :  { %95 = vmatpush1.msra.mxu0 %v45_v6  ;;  %v57_v16 = vrot.slane %v52_v15, %v56_v14  ;;  %v61_v21 = vrot.slane %v52_v15, %v60_v20  ;;  %s224_s26 = scalar_lea.vmem %s160_s25, 128  ;;  %p229_p11 = scmp.lt.s32.totalorder %s160_s25, %s160_s25 }
  0x21   :  { %96 = vmatprep.subr.mxu0 %v44_v7  ;;  %p225_p10 = scmp.ne.s32.totalorder %s160_s25, %s224_s26  ;;  %p230_p12 = scmp.lt.s32.totalorder %s224_s26, %s224_s26 }
  0x22   :  { %97 = vmatpush1.msra.mxu0 %v43_v8 }
  0x23   :  { %98 = vmatprep.subr.mxu0 %v42_v9  ;;  %p231_p13 = por %p230_p12, %p229_p11 }
  0x24   :  { %99 = vmatpush1.msra.mxu0 %v41_v10 }
  0x25   :  { %169 = vmatmul.mubr.msk.f32.vlgmr.msra.gmra.mxu0 %vm64_vm0, %v51_v11  ;;  %p232_p0 = pnand %p231_p13, %p225_p10 }
  0xe5   :  { %v134_v17 = vpop.f32.mrf.mxu0 }
  0xe6   :  { %v135_v18 = vadd.f32 %v134_v17, %v57_v16 }
  0xe7   :  { %v136_v22 = vpop.f32.mrf.mxu0 }
  0xe8   :  { %178 = vtanh.f32 %v135_v18  ;;  %v137_v23 = vadd.f32 %v136_v22, %v61_v21 }
  0xea   :  { %v170_v24 = vmul.f32 -1.442695, %v137_v23 }
  0xec   :  { %180 = vpow2.f32 %v170_v24 }
  0xf5   :  { %v179_v19 = vpop.eup %178 }
  0xf6   :  { %146 = vrot.lane.b32.xlu0 %v179_v19, %s255_s24 }
  0xf9   :  { %v181_v25 = vpop.eup %180 }
  0xfa   :  { %v143_v26 = vadd.f32 1.0, %v181_v25 }
  0xfc   :  { %182 = vrcp.f32 %v143_v26 }
 0x109   :  { %v183_v29 = vpop.eup %182 }
 0x168   :  { %v147_v27 = vpop.permute.xlu0 %146 }
 0x169   :  { %v148_v28 = vsub.f32 %v179_v19, %v147_v27 }
 0x16b   :  { %v149_v30 = vmul.f32 %v183_v29, %v148_v28 }
 0x16d   :  { %v150_v31 = vadd.f32 %v149_v30, %v147_v27 }
 0x16f   :  { %152 = vst.msk [vmem:[#allocation7] sm:$0xff] %vm151_vm1, %v150_v31 }
 0x170   :  { %235 = shalt.err (!%p232_p0)
}
 0x171   :  { %162 = dma.vmem_to_hbm [thread:$0]  %s160_s25, 128, %s292_s3, [#allocation4]  }
 0x172   :  { %248 = dma.done.wait [#allocation4], 128  }
 0x173   :  { %249 = vsyncadd [#allocation4], 4294967168 }
 0x174   :  { %166 = vsyncpa [#allocation3], 1 }
 0x175   :  { %167 = vsyncpa [#allocation6], 1 }
 0x176   :  { %168 = vsyncpa [#allocation4], 1 }

</bundles_post_ra>
